<compile_context>
chip_gen: v5e
topology: v5e:2x2
jax: 0.10.0
libtpu: 0.0.40
codegen_flags: <defaults>
</compile_context>

<pallas_src>
import functools

import jax
import jax.numpy as jnp
from jax.experimental import pallas as pl
from jax.experimental.pallas import tpu as pltpu


def _round_up(n, m):
    return (n + m - 1) // m * m


def _pack_layout(sizes, align=128):
    """Lane-aligned offsets for packing 1-D vectors into one (1, N) buffer."""
    offs, off = [], 0
    for s in sizes:
        offs.append(off)
        off += _round_up(s, align)
    return offs, off


def _leaky_relu(x, slope=0.01):
    # nn.LeakyReLU() default negative_slope = 0.01; maps to one VPU max.
    return jnp.maximum(x, slope * x)


# ----------------------------------------------------------------------------
# Pallas kernel: whole eval-mode hot path
#   5 MXU matmuls, all bf16 x bf16 -> f32 accumulate; shifts / activations f32.
# ----------------------------------------------------------------------------
def vmgp_kernel(x_ref, w1_ref, w2_ref, wmu_ref, wr1_ref, w2blk_ref, vec_ref,
                out_ref, *, dim1, dim2, latent, nreg, out_dim, out_pad, offs):
    f32 = jnp.float32
    bf16 = jnp.bfloat16

    # Packed per-feature vectors; all offsets are 128-lane aligned.
    t1 = vec_ref[:, offs[0]:offs[0] + dim1]
    t2 = vec_ref[:, offs[1]:offs[1] + dim2]
    bmu = vec_ref[:, offs[2]:offs[2] + latent]
    tr = vec_ref[:, offs[3]:offs[3] + nreg]
    br2 = vec_ref[:, offs[4]:offs[4] + out_pad]

    # encoder: (Linear * BN-scale folded, bf16 weights) -> +shift -> LeakyReLU
    x = x_ref[...]                                   # bf16 from the wrapper
    h1 = jnp.dot(x, w1_ref[...], preferred_element_type=f32)
    h1 = _leaky_relu(h1 + t1)
    h2 = jnp.dot(h1.astype(bf16), w2_ref[...], preferred_element_type=f32)
    h2 = _leaky_relu(h2 + t2)

    # fc_mus (eval mode: zs = mu)
    mu = jnp.dot(h2.astype(bf16), wmu_ref[...], preferred_element_type=f32) + bmu

    # all regressor heads fused: one wide matmul for first Linear (+BN folded)
    hr = jnp.dot(mu.astype(bf16), wr1_ref[...], preferred_element_type=f32)
    hr = _leaky_relu(hr + tr)

    # second Linear of every head as ONE block-diagonal MXU matmul (+ bias),
    # then slice out the real out_dim lanes for a tiny output writeback.
    y = jnp.dot(hr.astype(bf16), w2blk_ref[...], preferred_element_type=f32) + br2
    out_ref[...] = y[:, :out_dim]


# ----------------------------------------------------------------------------
# Parameter setup (deterministic) + folding / packing glue
# ----------------------------------------------------------------------------
def init_params(key, input_dim, out_dim, latent_dim, hidden_dims, reg_scale):
    dim1, dim2 = hidden_dims
    rdim = reg_scale * latent_dim
    ks = jax.random.split(key, 16)

    def lin(k, fan_in, fan_out):
        bound = 1.0 / jnp.sqrt(fan_in)
        kw, kb = jax.random.split(k)
        w = jax.random.uniform(kw, (fan_in, fan_out), jnp.float32, -bound, bound)
        b = jax.random.uniform(kb, (fan_out,), jnp.float32, -bound, bound)
        return w, b

    def bn(k, dim):
        kg, kb = jax.random.split(k)
        gamma = 1.0 + 0.1 * jax.random.normal(kg, (dim,), jnp.float32)
        beta = 0.05 * jax.random.normal(kb, (dim,), jnp.float32)
        run_mean = jnp.zeros((dim,), jnp.float32)
        run_var = jnp.ones((dim,), jnp.float32)
        return gamma, beta, run_mean, run_var

    p = {}
    p["w1"], p["b1"] = lin(ks[0], input_dim, dim1)
    p["bn1"] = bn(ks[1], dim1)
    p["w2"], p["b2"] = lin(ks[2], dim1, dim2)
    p["bn2"] = bn(ks[3], dim2)
    p["wmu"], p["bmu"] = lin(ks[4], dim2, latent_dim)
    # (fc_vars / decoder params exist in the module but are unused on the
    #  eval-mode forward path, so they are not materialised here.)
    heads = []
    for i in range(out_dim):
        ki = jax.random.fold_in(ks[5], i)
        k1, k2, k3 = jax.random.split(ki, 3)
        wr1, br1 = lin(k1, latent_dim, rdim)
        bnr = bn(k2, rdim)
        wr2, br2 = lin(k3, rdim, 1)
        heads.append((wr1, br1, bnr, wr2, br2))
    p["heads"] = heads
    return p


def fold_bn(bias, bn_params, eps=1e-5):
    """Fold Linear bias + eval-mode BatchNorm into per-feature scale/shift."""
    gamma, beta, rm, rv = bn_params
    scale = gamma / jnp.sqrt(rv + eps)
    shift = (bias - rm) * scale + beta
    return scale, shift


def build_kernel_args(params, out_dim, latent_dim, reg_scale):
    rdim = reg_scale * latent_dim
    nreg = out_dim * rdim
    out_pad = _round_up(out_dim, 128)

    s1, t1 = fold_bn(params["b1"], params["bn1"])
    s2, t2 = fold_bn(params["b2"], params["bn2"])

    # Fold BN scale into the weight columns: (x @ W) * s == x @ (W * s).
    # Weights stored in bf16 (halves HBM/VMEM bytes); shifts stay f32.
    w1f = (params["w1"] * s1[None, :]).astype(jnp.bfloat16)
    w2f = (params["w2"] * s2[None, :]).astype(jnp.bfloat16)
    wmuf = params["wmu"].astype(jnp.bfloat16)

    wr1_cols, tr_list = [], []
    w2blk = jnp.zeros((nreg, out_pad), jnp.float32)
    br2_pad = jnp.zeros((out_pad,), jnp.float32)
    for i, (wr1, br1, bnr, wr2, br2) in enumerate(params["heads"]):
        s, t = fold_bn(br1, bnr)
        wr1_cols.append(wr1 * s[None, :])
        tr_list.append(t)
        # block-diagonal second Linear: head i uses rows [i*rdim, (i+1)*rdim)
        w2blk = w2blk.at[i * rdim:(i + 1) * rdim, i].set(wr2[:, 0])
        br2_pad = br2_pad.at[i].set(br2[0])
    wr1f = jnp.concatenate(wr1_cols, axis=1).astype(jnp.bfloat16)
    tr_all = jnp.concatenate(tr_list)
    w2blkf = w2blk.astype(jnp.bfloat16)

    dim1, dim2, latent = w1f.shape[1], w2f.shape[1], wmuf.shape[1]
    segs = [t1, t2, params["bmu"], tr_all, br2_pad]
    offs, total = _pack_layout([dim1, dim2, latent, nreg, out_pad])
    vec = jnp.zeros((1, total), jnp.float32)
    for off, v in zip(offs, segs):
        vec = vec.at[0, off:off + v.shape[0]].set(v)

    return (w1f, w2f, wmuf, wr1f, w2blkf, vec)


# ----------------------------------------------------------------------------
# Wrapper: 1-D batch grid, weights resident in VMEM, tiny (bp, out_dim) output.
# ----------------------------------------------------------------------------
@functools.partial(jax.jit, static_argnames=("out_dim", "tile_b"))
def vmgp_forward(x, kernel_args, out_dim, tile_b=512):
    w1, w2, wmu, wr1, w2blk, vec = kernel_args
    in_dim, dim1 = w1.shape
    dim2 = w2.shape[1]
    latent = wmu.shape[1]
    nreg = wr1.shape[1]
    out_pad = w2blk.shape[1]
    offs, total = _pack_layout([dim1, dim2, latent, nreg, out_pad])
    assert vec.shape == (1, total)

    batch = x.shape[0]
    bp8 = _round_up(batch, 8)
    tb = min(tile_b, bp8)
    # v7x has 2 TensorCores: when a large batch would fit in a single tile,
    # split it into >=2 grid steps so ("parallel",) can shard across cores.
    if tb == bp8 and bp8 >= 512:
        tb = _round_up((bp8 + 1) // 2, 8)
    bp = _round_up(batch, tb)

    # bf16 input: halves the input DMA and matches the bf16 MXU path.
    x = x.astype(jnp.bfloat16)
    if bp != batch:
        x = jnp.pad(x, ((0, bp - batch), (0, 0)))

    kernel = functools.partial(
        vmgp_kernel, dim1=dim1, dim2=dim2, latent=latent, nreg=nreg,
        out_dim=out_dim, out_pad=out_pad, offs=tuple(offs))

    resident = lambda i: (0, 0)  # weights stay parked in VMEM across the grid

    y = pl.pallas_call(
        kernel,
        out_shape=jax.ShapeDtypeStruct((bp, out_dim), jnp.float32),
        grid=(pl.cdiv(bp, tb),),
        in_specs=[
            pl.BlockSpec((tb, in_dim), lambda i: (i, 0)),   # x: tiled on batch
            pl.BlockSpec(w1.shape, resident),
            pl.BlockSpec(w2.shape, resident),
            pl.BlockSpec(wmu.shape, resident),
            pl.BlockSpec(wr1.shape, resident),
            pl.BlockSpec(w2blk.shape, resident),
            pl.BlockSpec(vec.shape, resident),
        ],
        out_specs=pl.BlockSpec((tb, out_dim), lambda i: (i, 0)),
        compiler_params=pltpu.CompilerParams(
            dimension_semantics=("parallel",),          # shards across TCs (v7x)
            vmem_limit_bytes=48 * 1024 * 1024),         # headroom under v7x 64MiB
    )(x, w1, w2, wmu, wr1, w2blk, vec)
    return y[:batch]


# ----------------------------------------------------------------------------
# References for correctness
# ----------------------------------------------------------------------------
def vmgp_reference_folded(x, kernel_args, out_dim):
    """Same folded bf16 math as the kernel (tight tolerance check)."""
    w1, w2, wmu, wr1, w2blk, vec = kernel_args
    f32, bf16 = jnp.float32, jnp.bfloat16
    dim1, dim2, latent = w1.shape[1], w2.shape[1], wmu.shape[1]
    nreg = wr1.shape[1]
    out_pad = w2blk.shape[1]
    offs, _ = _pack_layout([dim1, dim2, latent, nreg, out_pad])
    v = vec[0]
    t1 = v[offs[0]:offs[0] + dim1]
    t2 = v[offs[1]:offs[1] + dim2]
    bmu = v[offs[2]:offs[2] + latent]
    tr = v[offs[3]:offs[3] + nreg]
    br2 = v[offs[4]:offs[4] + out_pad]

    xb = x.astype(bf16)
    h1 = _leaky_relu(jnp.dot(xb, w1, preferred_element_type=f32) + t1)
    h2 = _leaky_relu(jnp.dot(h1.astype(bf16), w2, preferred_element_type=f32) + t2)
    mu = jnp.dot(h2.astype(bf16), wmu, preferred_element_type=f32) + bmu
    hr = _leaky_relu(jnp.dot(mu.astype(bf16), wr1, preferred_element_type=f32) + tr)
    y = jnp.dot(hr.astype(bf16), w2blk, preferred_element_type=f32) + br2
    return y[:, :out_dim]


def vmgp_reference_unfused_f32(x, params, out_dim, eps=1e-5):
    """Original (unfused, unquantized) eval-mode VMGP math in f32."""
    def bn_eval(h, bnp):
        gamma, beta, rm, rv = bnp
        return (h - rm) / jnp.sqrt(rv + eps) * gamma + beta

    h = _leaky_relu(bn_eval(x @ params["w1"] + params["b1"], params["bn1"]))
    h = _leaky_relu(bn_eval(h @ params["w2"] + params["b2"], params["bn2"]))
    mu = h @ params["wmu"] + params["bmu"]
    outs = []
    for (wr1, br1, bnr, wr2, br2) in params["heads"]:
        hr = _leaky_relu(bn_eval(mu @ wr1 + br1, bnr))
        outs.append(hr @ wr2 + br2)
    return jnp.concatenate(outs, axis=1)


if __name__ == "__main__":
    # Small, module-consistent shapes.
    batch = 8
    input_dim = 16          # <= 64 -> dropout = 0 in the PyTorch module
    out_dim = 2
    latent_dim = 32
    hidden_dims = [256, 128]
    reg_scale = 4

    key = jax.random.PRNGKey(0)
    kx, kp = jax.random.split(key)
    x = jax.random.normal(kx, (batch, input_dim), jnp.float32)

    params = init_params(kp, input_dim, out_dim, latent_dim, hidden_dims, reg_scale)
    kernel_args = build_kernel_args(params, out_dim, latent_dim, reg_scale)

    y = vmgp_forward(x, kernel_args, out_dim)
    y = jax.block_until_ready(y)
    assert y.shape == (batch, out_dim)

    # 1) tight check vs. the same folded bf16 math
    y_folded = vmgp_reference_folded(x, kernel_args, out_dim)
    assert jnp.allclose(y, y_folded, rtol=1e-3, atol=1e-3), \
        "kernel mismatch vs folded reference"

    # 2) looser check vs. the ORIGINAL unfused f32 model math (bf16 weight
    #    storage + BN folding introduces small quantization error)
    y_f32 = vmgp_reference_unfused_f32(x, params, out_dim)
    assert jnp.allclose(y, y_f32, rtol=5e-2, atol=5e-2), \
        "kernel mismatch vs unfused f32 reference"

    print("KERNEL_OK")
</pallas_src>

<mosaic_0001>
module attributes {stable_mosaic.version = 11 : i64} {
  func.func @vmgp_kernel(%arg0: i32, %arg1: memref<8x16xbf16, #tpu.memory_space<vmem>>, %arg2: memref<16x256xbf16, #tpu.memory_space<vmem>>, %arg3: memref<256x128xbf16, #tpu.memory_space<vmem>>, %arg4: memref<128x32xbf16, #tpu.memory_space<vmem>>, %arg5: memref<32x256xbf16, #tpu.memory_space<vmem>>, %arg6: memref<256x128xbf16, #tpu.memory_space<vmem>>, %arg7: memref<1x896xf32, #tpu.memory_space<vmem>>, %arg8: memref<8x2xf32, #tpu.memory_space<vmem>>) attributes {dimension_semantics = [#tpu.dimension_semantics<parallel>], iteration_bounds = array<i64: 1>, scalar_prefetch = 0 : i64, scratch_operands = 0 : i64, tpu.core_type = #tpu.core_type<tc>, window_params = [{transform_indices = @transform_0, window_bounds = array<i64: 8, 16>}, {pipeline_mode = #tpu.pipeline_mode<synchronous>, transform_indices = @transform_1, window_bounds = array<i64: 16, 256>}, {pipeline_mode = #tpu.pipeline_mode<synchronous>, transform_indices = @transform_2, window_bounds = array<i64: 256, 128>}, {pipeline_mode = #tpu.pipeline_mode<synchronous>, transform_indices = @transform_3, window_bounds = array<i64: 128, 32>}, {pipeline_mode = #tpu.pipeline_mode<synchronous>, transform_indices = @transform_4, window_bounds = array<i64: 32, 256>}, {pipeline_mode = #tpu.pipeline_mode<synchronous>, transform_indices = @transform_5, window_bounds = array<i64: 256, 128>}, {pipeline_mode = #tpu.pipeline_mode<synchronous>, transform_indices = @transform_6, window_bounds = array<i64: 1, 896>}, {transform_indices = @transform_7, window_bounds = array<i64: 8, 2>}]} {
    %c0 = arith.constant 0 : index
    %c0_0 = arith.constant 0 : index
    %0 = vector.load %arg7[%c0, %c0_0] : memref<1x896xf32, #tpu.memory_space<vmem>>, vector<1x256xf32>
    %c0_1 = arith.constant 0 : index
    %c256 = arith.constant 256 : index
    %1 = vector.load %arg7[%c0_1, %c256] : memref<1x896xf32, #tpu.memory_space<vmem>>, vector<1x128xf32>
    %c0_2 = arith.constant 0 : index
    %c384 = arith.constant 384 : index
    %2 = vector.load %arg7[%c0_2, %c384] : memref<1x896xf32, #tpu.memory_space<vmem>>, vector<1x32xf32>
    %c0_3 = arith.constant 0 : index
    %c512 = arith.constant 512 : index
    %3 = vector.load %arg7[%c0_3, %c512] : memref<1x896xf32, #tpu.memory_space<vmem>>, vector<1x256xf32>
    %c0_4 = arith.constant 0 : index
    %c768 = arith.constant 768 : index
    %4 = vector.load %arg7[%c0_4, %c768] : memref<1x896xf32, #tpu.memory_space<vmem>>, vector<1x128xf32>
    %c0_5 = arith.constant 0 : index
    %c0_6 = arith.constant 0 : index
    %5 = vector.load %arg1[%c0_5, %c0_6] : memref<8x16xbf16, #tpu.memory_space<vmem>>, vector<8x16xbf16>
    %c0_7 = arith.constant 0 : index
    %c0_8 = arith.constant 0 : index
    %6 = vector.load %arg2[%c0_7, %c0_8] : memref<16x256xbf16, #tpu.memory_space<vmem>>, vector<16x256xbf16>
    %cst = arith.constant dense<0.000000e+00> : vector<8x256xf32>
    %7 = tpu.matmul %5, %6, %cst {dimension_numbers = #tpu.dot_dimension_numbers<[1], [0], [0], [1], [0, 0, 1, 1], [], []>} : vector<8x16xbf16>, vector<16x256xbf16>, vector<8x256xf32> -> vector<8x256xf32>
    %8 = vector.broadcast %0 : vector<1x256xf32> to vector<8x256xf32>
    %9 = arith.addf %7, %8 : vector<8x256xf32>
    %cst_9 = arith.constant 0.00999999977 : f32
    %10 = vector.broadcast %cst_9 : f32 to vector<8x256xf32>
    %11 = arith.mulf %10, %9 : vector<8x256xf32>
    %12 = arith.maximumf %9, %11 : vector<8x256xf32>
    %13 = arith.truncf %12 : vector<8x256xf32> to vector<8x256xbf16>
    %c0_10 = arith.constant 0 : index
    %c0_11 = arith.constant 0 : index
    %14 = vector.load %arg3[%c0_10, %c0_11] : memref<256x128xbf16, #tpu.memory_space<vmem>>, vector<256x128xbf16>
    %cst_12 = arith.constant dense<0.000000e+00> : vector<8x128xf32>
    %15 = tpu.matmul %13, %14, %cst_12 {dimension_numbers = #tpu.dot_dimension_numbers<[1], [0], [0], [1], [0, 0, 1, 1], [], []>} : vector<8x256xbf16>, vector<256x128xbf16>, vector<8x128xf32> -> vector<8x128xf32>
    %16 = vector.broadcast %1 : vector<1x128xf32> to vector<8x128xf32>
    %17 = arith.addf %15, %16 : vector<8x128xf32>
    %cst_13 = arith.constant 0.00999999977 : f32
    %18 = vector.broadcast %cst_13 : f32 to vector<8x128xf32>
    %19 = arith.mulf %18, %17 : vector<8x128xf32>
    %20 = arith.maximumf %17, %19 : vector<8x128xf32>
    %21 = arith.truncf %20 : vector<8x128xf32> to vector<8x128xbf16>
    %c0_14 = arith.constant 0 : index
    %c0_15 = arith.constant 0 : index
    %22 = vector.load %arg4[%c0_14, %c0_15] : memref<128x32xbf16, #tpu.memory_space<vmem>>, vector<128x32xbf16>
    %cst_16 = arith.constant dense<0.000000e+00> : vector<8x32xf32>
    %23 = tpu.matmul %21, %22, %cst_16 {dimension_numbers = #tpu.dot_dimension_numbers<[1], [0], [0], [1], [0, 0, 1, 1], [], []>} : vector<8x128xbf16>, vector<128x32xbf16>, vector<8x32xf32> -> vector<8x32xf32>
    %24 = vector.broadcast %2 : vector<1x32xf32> to vector<8x32xf32>
    %25 = arith.addf %23, %24 : vector<8x32xf32>
    %26 = arith.truncf %25 : vector<8x32xf32> to vector<8x32xbf16>
    %c0_17 = arith.constant 0 : index
    %c0_18 = arith.constant 0 : index
    %27 = vector.load %arg5[%c0_17, %c0_18] : memref<32x256xbf16, #tpu.memory_space<vmem>>, vector<32x256xbf16>
    %cst_19 = arith.constant dense<0.000000e+00> : vector<8x256xf32>
    %28 = tpu.matmul %26, %27, %cst_19 {dimension_numbers = #tpu.dot_dimension_numbers<[1], [0], [0], [1], [0, 0, 1, 1], [], []>} : vector<8x32xbf16>, vector<32x256xbf16>, vector<8x256xf32> -> vector<8x256xf32>
    %29 = vector.broadcast %3 : vector<1x256xf32> to vector<8x256xf32>
    %30 = arith.addf %28, %29 : vector<8x256xf32>
    %cst_20 = arith.constant 0.00999999977 : f32
    %31 = vector.broadcast %cst_20 : f32 to vector<8x256xf32>
    %32 = arith.mulf %31, %30 : vector<8x256xf32>
    %33 = arith.maximumf %30, %32 : vector<8x256xf32>
    %34 = arith.truncf %33 : vector<8x256xf32> to vector<8x256xbf16>
    %c0_21 = arith.constant 0 : index
    %c0_22 = arith.constant 0 : index
    %35 = vector.load %arg6[%c0_21, %c0_22] : memref<256x128xbf16, #tpu.memory_space<vmem>>, vector<256x128xbf16>
    %cst_23 = arith.constant dense<0.000000e+00> : vector<8x128xf32>
    %36 = tpu.matmul %34, %35, %cst_23 {dimension_numbers = #tpu.dot_dimension_numbers<[1], [0], [0], [1], [0, 0, 1, 1], [], []>} : vector<8x256xbf16>, vector<256x128xbf16>, vector<8x128xf32> -> vector<8x128xf32>
    %37 = vector.broadcast %4 : vector<1x128xf32> to vector<8x128xf32>
    %38 = arith.addf %36, %37 : vector<8x128xf32>
    %39 = vector.extract_strided_slice %38 {offsets = [0, 0], sizes = [8, 2], strides = [1, 1]} : vector<8x128xf32> to vector<8x2xf32>
    %c0_24 = arith.constant 0 : index
    %c0_25 = arith.constant 0 : index
    %40 = vector.load %arg8[%c0_24, %c0_25] : memref<8x2xf32, #tpu.memory_space<vmem>>, vector<8x2xf32>
    tpu.vector_store %arg8[%c0_24, %c0_25], %39 {strides = array<i32>} : memref<8x2xf32, #tpu.memory_space<vmem>>, vector<8x2xf32>,
    return
  }
  func.func @transform_0(%arg0: i32) -> (i32, i32) {
    %c0_i32 = arith.constant 0 : i32
    %c0_i32_0 = arith.constant 0 : i32
    return %arg0, %c0_i32 : i32, i32
  }
  func.func @transform_1(%arg0: i32) -> (i32, i32) {
    %c0_i32 = arith.constant 0 : i32
    %c0_i32_0 = arith.constant 0 : i32
    %c0_i32_1 = arith.constant 0 : i32
    return %c0_i32, %c0_i32_0 : i32, i32
  }
  func.func @transform_2(%arg0: i32) -> (i32, i32) {
    %c0_i32 = arith.constant 0 : i32
    %c0_i32_0 = arith.constant 0 : i32
    %c0_i32_1 = arith.constant 0 : i32
    return %c0_i32, %c0_i32_0 : i32, i32
  }
  func.func @transform_3(%arg0: i32) -> (i32, i32) {
    %c0_i32 = arith.constant 0 : i32
    %c0_i32_0 = arith.constant 0 : i32
    %c0_i32_1 = arith.constant 0 : i32
    return %c0_i32, %c0_i32_0 : i32, i32
  }
  func.func @transform_4(%arg0: i32) -> (i32, i32) {
    %c0_i32 = arith.constant 0 : i32
    %c0_i32_0 = arith.constant 0 : i32
    %c0_i32_1 = arith.constant 0 : i32
    return %c0_i32, %c0_i32_0 : i32, i32
  }
  func.func @transform_5(%arg0: i32) -> (i32, i32) {
    %c0_i32 = arith.constant 0 : i32
    %c0_i32_0 = arith.constant 0 : i32
    %c0_i32_1 = arith.constant 0 : i32
    return %c0_i32, %c0_i32_0 : i32, i32
  }
  func.func @transform_6(%arg0: i32) -> (i32, i32) {
    %c0_i32 = arith.constant 0 : i32
    %c0_i32_0 = arith.constant 0 : i32
    %c0_i32_1 = arith.constant 0 : i32
    return %c0_i32, %c0_i32_0 : i32, i32
  }
  func.func @transform_7(%arg0: i32) -> (i32, i32) {
    %c0_i32 = arith.constant 0 : i32
    %c0_i32_0 = arith.constant 0 : i32
    return %arg0, %c0_i32 : i32, i32
  }
}

</mosaic_0001>

<bundles_post_ra>
// kernel: vmgp_forward.1
= control target key start
LH: loop header
LB: loop body
LE: loop exit
PB: predicated region body
PF: predicated region fallthrough
CT: control target
= control target key end

     0   :  { %12 = vsyncpa [#allocation3], 0  ;;  %s1013_s0 = inlined_call_operand.vmem [shape: bf16[8,16], index: 0, kind: input, shape index: {}]   ;;  %s1014_s1 = inlined_call_operand.vmem [shape: bf16[16,256], index: 1, kind: input, shape index: {}]   ;;  %s1015_s2 = inlined_call_operand.hbm [shape: bf16[256,128], index: 2, kind: input, shape index: {}]   ;;  %s1016_s3 = inlined_call_operand.vmem [shape: bf16[128,32], index: 3, kind: input, shape index: {}]   ;;  %s1017_s4 = inlined_call_operand.vmem [shape: bf16[32,256], index: 4, kind: input, shape index: {}]   ;;  %s1018_s5 = inlined_call_operand.hbm [shape: bf16[256,128], index: 5, kind: input, shape index: {}]   ;;  %s1019_s6 = inlined_call_operand.vmem [shape: f32[1,896], index: 6, kind: input, shape index: {}]   ;;  %s1020_s7 = inlined_call_operand.vmem [shape: f32[8,2], index: 7, kind: output, shape index: {}]  }
   0x1   :  { %s22_s26 = sshll.u32 %s1015_s2, 4  ;;  %s23_s26 = int_to_ptr.hbm [resolvable:$true] %s22_s26 }
   0x2   :  { %13 = vsyncpa [#allocation5], 0  ;;  %s882_s27 = smov [#allocation2]   ;;  %s39_s8 = sshll.u32 %s1018_s5, 4  ;;  %s40_s8 = int_to_ptr.hbm [resolvable:$true] %s39_s8 }
   0x3   :  { %s24_s28 = sshll.u32 %s882_s27, 4  ;;  %s883_s9 = smov 64   ;;  %s25_s28 = int_to_ptr.vmem [resolvable:$true] %s24_s28 }
   0x4   :  { %s884_s10 = smov 4   ;;  %s885_s11 = smov [#allocation4]  }
   0x5   :  { %30 = dma.hbm_to_vmem [thread:$0]  %s23_s26, 2048, %s25_s28, [#allocation3], %s883_s9, %s883_s9, %s884_s10  }
   0x6   :  { %s41_s12 = sshll.u32 %s885_s11, 4  ;;  %s42_s12 = int_to_ptr.vmem [resolvable:$true] %s41_s12 }
   0x7   :  { %47 = dma.hbm_to_vmem [thread:$0]  %s40_s8, 2048, %s42_s12, [#allocation5], %s883_s9, %s883_s9, %s884_s10  }
   0x8   :  { %878 = dma.done.wait [#allocation3], 2048  }
   0x9   :  { %879 = vsyncadd [#allocation3], 4294965248 }
   0xa   :  { %880 = dma.done.wait [#allocation5], 2048  }
   0xb   :  { %881 = vsyncadd [#allocation5], 4294965248  ;;  %v591_v0 = vld [vmem:[%s1014_s1] sm:$0xf]  ;;  %v778_v1 = vld [vmem:[%s1014_s1 + $0x4] sm:$0xf0] }
   0xc   :  { %v777_v2 = vld [vmem:[%s1014_s1 + $0x4] sm:$0xf]  ;;  %v592_v3 = vor.u32 %v778_v1, %v591_v0  ;;  %v593_v4 = vld [vmem:[%s1014_s1 + $0x8] sm:$0xf0]  ;;  %v786_v5 = vld [vmem:[#allocation2 + $0x38] sm:$0xff]  ;;  %vm82_vm0 = vcmask 130048  }
   0xd   :  { %v596_v6 = vor.u32 %v777_v2, %v593_v4  ;;  %v794_v7 = vld [vmem:[#allocation2 + $0x78] sm:$0xff]  ;;  %v64_v8 = vld [vmem:[%s1013_s0] sm:$0xf]  ;;  %249 = vmatpush.bf16.msra.mxu2 %v786_v5  ;;  %v785_v9 = vld [vmem:[#allocation2 + $0x30] sm:$0xff]  ;;  %vm388_vm1 = vcmask 261120   ;;  %vm581_vm2 = vcmask 15360  }
   0xe   :  { %93 = vmatpush.bf16.msra.mxu0 %v592_v3  ;;  %262 = vmatpush.bf16.msra.mxu3 %v794_v7  ;;  %v793_v10 = vld [vmem:[#allocation2 + $0x70] sm:$0xff]  ;;  %v784_v11 = vld [vmem:[#allocation2 + $0x28] sm:$0xff]  ;;  %v783_v13 = vld [vmem:[#allocation2 + $0x20] sm:$0xff] }
   0xf   :  { %106 = vmatpush.bf16.msra.mxu1 %v596_v6  ;;  %v792_v12 = vld [vmem:[#allocation2 + $0x68] sm:$0xff]  ;;  %v791_v14 = vld [vmem:[#allocation2 + $0x60] sm:$0xff]  ;;  %v782_v15 = vld [vmem:[#allocation2 + $0x18] sm:$0xff] }
  0x10   :  { %v790_v16 = vld [vmem:[#allocation2 + $0x58] sm:$0xff]  ;;  %v781_v17 = vld [vmem:[#allocation2 + $0x10] sm:$0xff]  ;;  %v780_v19 = vld [vmem:[#allocation2 + $0x8] sm:$0xff] }
  0x11   :  { %597 = vmatmul.msk.bf16.vlgmr.msra.gmra.mxu0 %vm82_vm0, %v64_v8  ;;  %250 = vmatpush.bf16.msra.mxu2 %v785_v9  ;;  %v789_v18 = vld [vmem:[#allocation2 + $0x50] sm:$0xff]  ;;  %v788_v20 = vld [vmem:[#allocation2 + $0x48] sm:$0xff]  ;;  %v779_v21 = vld [vmem:[#allocation2] sm:$0xff] }
  0x12   :  { %598 = vmatmul.msk.bf16.vlgmr.msra.gmra.mxu1 %vm82_vm0, %v64_v8  ;;  %263 = vmatpush.bf16.msra.mxu3 %v793_v10  ;;  %v787_v22 = vld [vmem:[#allocation2 + $0x40] sm:$0xff]  ;;  %v802_v23 = vld [vmem:[%s1016_s3 + $0x38] sm:$0xff]  ;;  %v801_v24 = vld [vmem:[%s1016_s3 + $0x30] sm:$0xff] }
  0x13   :  { %345 = vmatpush.bf16.msrb.mxu0 %v802_v23  ;;  %v800_v25 = vld [vmem:[%s1016_s3 + $0x28] sm:$0xff]  ;;  %v799_v26 = vld [vmem:[%s1016_s3 + $0x20] sm:$0xff]  ;;  %v798_v27 = vld [vmem:[%s1016_s3 + $0x18] sm:$0xff] }
  0x14   :  { %v59_v28 = vld [vmem:[%s1019_s6] sm:$0x3]  ;;  %v797_v43 = vld [vmem:[%s1016_s3 + $0x10] sm:$0xff]  ;;  %v796_v44 = vld [vmem:[%s1016_s3 + $0x8] sm:$0xff] }
  0x15   :  { %251 = vmatpush.bf16.msra.mxu2 %v784_v11  ;;  %v68_v29 = vperm.slane %v59_v28, 0  ;;  %v69_v30 = vperm.slane %v59_v28, 1  ;;  %v795_v45 = vld [vmem:[%s1016_s3] sm:$0xff]  ;;  %v705_v46 = vld [vmem:[%s1017_s4 + $0x10] sm:$0xf]  ;;  %v814_v4 = vld [vmem:[#allocation4 + $0x38] sm:$0xff] }
  0x16   :  { %264 = vmatpush.bf16.msra.mxu3 %v792_v12  ;;  %v806_v47 = vld [vmem:[%s1017_s4 + $0x14] sm:$0xf0]  ;;  %v697_v48 = vld [vmem:[%s1017_s4] sm:$0xf]  ;;  %v804_v50 = vld [vmem:[%s1017_s4 + $0x4] sm:$0xf0] }
  0x17   :  { %346 = vmatpush.bf16.msrb.mxu0 %v801_v24  ;;  %v706_v49 = vor.u32 %v806_v47, %v705_v46  ;;  %v698_v51 = vor.u32 %v804_v50, %v697_v48  ;;  %v827_v52 = vld [vmem:[%s1019_s6 + $0x2] ss:$0 sm:$0xff]  ;;  %v805_v62 = vld [vmem:[%s1017_s4 + $0x14] sm:$0xf]  ;;  %v707_v63 = vld [vmem:[%s1017_s4 + $0x18] sm:$0xf0] }
  0x18   :  { %v710_v0 = vor.u32 %v805_v62, %v707_v63  ;;  %v803_v1 = vld [vmem:[%s1017_s4 + $0x4] sm:$0xf]  ;;  %v699_v2 = vld [vmem:[%s1017_s4 + $0x8] sm:$0xf0]  ;;  %v822_v5 = vld [vmem:[#allocation4 + $0x78] sm:$0xff] }
  0x19   :  { %252 = vmatpush.bf16.msra.mxu2 %v783_v13  ;;  %398 = vmatpush.bf16.msrb.mxu1 %v706_v49  ;;  %v702_v3 = vor.u32 %v803_v1, %v699_v2  ;;  %v813_v6 = vld [vmem:[#allocation4 + $0x30] sm:$0xff]  ;;  %v812_v8 = vld [vmem:[#allocation4 + $0x28] sm:$0xff]  ;;  %v828_v9 = vld [vmem:[%s1019_s6 + $0x3] ss:$0 sm:$0xff] }
  0x1a   :  { %265 = vmatpush.bf16.msra.mxu3 %v791_v14  ;;  %v821_v7 = vld [vmem:[#allocation4 + $0x70] sm:$0xff]  ;;  %v811_v10 = vld [vmem:[#allocation4 + $0x20] sm:$0xff]  ;;  %v810_v14 = vld [vmem:[#allocation4 + $0x18] sm:$0xff] }
  0x1b   :  { %347 = vmatpush.bf16.msrb.mxu0 %v800_v25  ;;  %v816_v23 = vld [vmem:[#allocation4 + $0x48] sm:$0xff]  ;;  %v815_v24 = vld [vmem:[#allocation4 + $0x40] sm:$0xff] }
  0x1c   :  { %v62_v25 = vld [vmem:[%s1019_s6 + $0x4] sm:$0x3] }
  0x1d   :  { %253 = vmatpush.bf16.msra.mxu2 %v782_v15  ;;  %399 = vmatpush.bf16.msrb.mxu1 %v698_v51  ;;  %v809_v15 = vld [vmem:[#allocation4 + $0x10] sm:$0xff] }
  0x1e   :  { %266 = vmatpush.bf16.msra.mxu3 %v790_v16 }
  0x1f   :  { %348 = vmatpush.bf16.msrb.mxu0 %v799_v26  ;;  %v364_v26 = vperm.slane %v62_v25, 0 }
  0x21   :  { %254 = vmatpush.bf16.msra.mxu2 %v781_v17  ;;  %411 = vmatpush.bf16.msra.mxu1 %v710_v0  ;;  %v808_v17 = vld [vmem:[#allocation4 + $0x8] sm:$0xff] }
  0x22   :  { %267 = vmatpush.bf16.msra.mxu3 %v789_v18  ;;  %v820_v18 = vld [vmem:[#allocation4 + $0x68] sm:$0xff] }
  0x23   :  { %349 = vmatpush.bf16.msrb.mxu0 %v798_v27 }
  0x25   :  { %255 = vmatpush.bf16.msra.mxu2 %v780_v19  ;;  %412 = vmatpush.bf16.msra.mxu1 %v702_v3  ;;  %v807_v19 = vld [vmem:[#allocation4] sm:$0xff] }
  0x26   :  { %268 = vmatpush.bf16.msra.mxu3 %v788_v20  ;;  %v819_v20 = vld [vmem:[#allocation4 + $0x60] sm:$0xff] }
  0x27   :  { %350 = vmatpush.bf16.msrb.mxu0 %v797_v43 }
  0x29   :  { %256 = vmatpush.bf16.msra.mxu2 %v779_v21  ;;  %v818_v21 = vld [vmem:[#allocation4 + $0x58] sm:$0xff] }
  0x2a   :  { %269 = vmatpush.bf16.msra.mxu3 %v787_v22  ;;  %v817_v22 = vld [vmem:[#allocation4 + $0x50] sm:$0xff] }
  0x2b   :  { %351 = vmatpush.bf16.msrb.mxu0 %v796_v44 }
  0x2d   :  { %555 = vmatpush.bf16.msrb.mxu2 %v814_v4 }
  0x2e   :  { %568 = vmatpush.bf16.msrb.mxu3 %v822_v5 }
  0x2f   :  { %352 = vmatpush.bf16.msrb.mxu0 %v795_v45 }
  0x31   :  { %556 = vmatpush.bf16.msrb.mxu2 %v813_v6 }
  0x32   :  { %569 = vmatpush.bf16.msrb.mxu3 %v821_v7 }
  0x35   :  { %557 = vmatpush.bf16.msrb.mxu2 %v812_v8 }
  0x36   :  { %570 = vmatpush.bf16.msrb.mxu3 %v820_v18 }
  0x39   :  { %558 = vmatpush.bf16.msrb.mxu2 %v811_v10 }
  0x3a   :  { %571 = vmatpush.bf16.msrb.mxu3 %v819_v20 }
  0x3d   :  { %559 = vmatpush.bf16.msrb.mxu2 %v810_v14 }
  0x3e   :  { %572 = vmatpush.bf16.msrb.mxu3 %v818_v21 }
  0x41   :  { %560 = vmatpush.bf16.msrb.mxu2 %v809_v15 }
  0x42   :  { %573 = vmatpush.bf16.msrb.mxu3 %v817_v22 }
  0x45   :  { %561 = vmatpush.bf16.msrb.mxu2 %v808_v17 }
  0x46   :  { %574 = vmatpush.bf16.msrb.mxu3 %v816_v23 }
  0x49   :  { %562 = vmatpush.bf16.msrb.mxu2 %v807_v19 }
  0x4a   :  { %575 = vmatpush.bf16.msrb.mxu3 %v815_v24 }
  0x8e   :  { %v95_v31 = vpop.f32.mrf.mxu0 }
  0x8f   :  { %v96_v32 = vadd.f32 %v95_v31, %v68_v29  ;;  %v108_v33 = vpop.f32.mrf.mxu1 }
  0x90   :  { %v109_v34 = vadd.f32 %v108_v33, %v69_v30  ;;  %v365_v33 = vperm.slane %v62_v25, 1 }
  0x91   :  { %v112_v35 = vmul.f32 0.01, %v96_v32 }
  0x92   :  { %v113_v36 = vmul.f32 0.01, %v109_v34 }
  0x93   :  { %v114_v37 = vmax.f32 %v96_v32, %v112_v35 }
  0x94   :  { %v115_v38 = vmax.f32 %v109_v34, %v113_v36 }
  0x95   :  { %v116_v39 = vpack.c.bf16 %v114_v37, %v114_v37 }
  0x96   :  { %v97_v40 = vpop.f32.mrf.mxu0  ;;  %v117_v41 = vpack.c.bf16 %v115_v38, %v115_v38 }
  0x97   :  { %v110_v42 = vpop.f32.mrf.mxu1  ;;  %257 = vmatmul.bf16.vlgmr.msra.gmra.mxu2 %v116_v39 }
  0x98   :  { %270 = vmatmul.bf16.vlgmr.msra.gmra.mxu3 %v117_v41  ;;  %v829_v42 = vld [vmem:[%s1019_s6 + $0x6] ss:$0 sm:$0xff] }
 0x11a   :  { %v258_v53 = vpop.f32.mrf.mxu2 }
 0x11b   :  { %v259_v54 = vadd.f32 %v827_v52, %v258_v53  ;;  %v271_v55 = vpop.f32.mrf.mxu3 }
 0x11d   :  { %v272_v56 = vadd.f32 %v271_v55, %v259_v54 }
 0x11f   :  { %v275_v57 = vmul.f32 0.01, %v272_v56 }
 0x121   :  { %v276_v58 = vmax.f32 %v272_v56, %v275_v57 }
 0x122   :  { %v260_v59 = vpop.f32.mrf.mxu2 }
 0x123   :  { %v277_v60 = vpack.c.bf16 %v276_v58, %v276_v58  ;;  %v273_v61 = vpop.f32.mrf.mxu3 }
 0x125   :  { %353 = vmatmul.bf16.vlgmr.msrb.gmra.mxu0 %v277_v60 }
 0x1a2   :  { %v354_v11 = vpop.f32.mrf.mxu0 }
 0x1a3   :  { %v355_v12 = vadd.f32 %v828_v9, %v354_v11 }
 0x1a5   :  { %v358_v13 = vpack.c.bf16 %v355_v12, %v355_v12 }
 0x1a7   :  { %711 = vmatmul.msk.bf16.vlgmr.msrb.gmra.mxu1 %vm388_vm1, %v358_v13 }
 0x1aa   :  { %v356_v16 = vpop.f32.mrf.mxu0 }
 0x1b7   :  { %712 = vmatmul.msk.bf16.vlgmr.msra.gmra.mxu1 %vm388_vm1, %v358_v13 }
 0x224   :  { %v401_v27 = vpop.f32.mrf.mxu1 }
 0x225   :  { %v402_v28 = vadd.f32 %v401_v27, %v364_v26 }
 0x227   :  { %v418_v29 = vmul.f32 0.01, %v402_v28 }
 0x229   :  { %v420_v30 = vmax.f32 %v402_v28, %v418_v29 }
 0x22b   :  { %v422_v31 = vpack.c.bf16 %v420_v30, %v420_v30 }
 0x22c   :  { %v403_v32 = vpop.f32.mrf.mxu1 }
 0x22d   :  { %563 = vmatmul.bf16.vlgmr.msrb.gmra.mxu2 %v422_v31 }
 0x234   :  { %v414_v34 = vpop.f32.mrf.mxu1 }
 0x235   :  { %v415_v35 = vadd.f32 %v414_v34, %v365_v33 }
 0x237   :  { %v419_v36 = vmul.f32 0.01, %v415_v35 }
 0x239   :  { %v421_v37 = vmax.f32 %v415_v35, %v419_v36 }
 0x23b   :  { %v423_v38 = vpack.c.bf16 %v421_v37, %v421_v37 }
 0x23c   :  { %v416_v39 = vpop.f32.mrf.mxu1 }
 0x23d   :  { %576 = vmatmul.bf16.vlgmr.msrb.gmra.mxu3 %v423_v38 }
 0x2b0   :  { %v564_v40 = vpop.f32.mrf.mxu2 }
 0x2b1   :  { %v565_v43 = vadd.f32 %v829_v42, %v564_v40 }
 0x2b8   :  { %v566_v41 = vpop.f32.mrf.mxu2 }
 0x2c0   :  { %v577_v44 = vpop.f32.mrf.mxu3 }
 0x2c1   :  { %v578_v45 = vadd.f32 %v577_v44, %v565_v43 }
 0x2c3   :  { %582 = vst.msk [vmem:[%s1020_s7] sm:$0xff] %vm581_vm2, %v578_v45 }
 0x2c8   :  { %v579_v46 = vpop.f32.mrf.mxu3 }
 0x2c9   :  { %587 = vsyncpa [#allocation3], 1 }
 0x2ca   :  { %588 = vsyncpa [#allocation5], 1 }

</bundles_post_ra>
